<compile_context>
chip_gen: v5e
topology: v5e:2x2
jax: 0.10.0
libtpu: 0.0.40
codegen_flags: <defaults>
</compile_context>

<pallas_src>
import jax
import jax.numpy as jnp
from jax.experimental import pallas as pl
from jax.experimental.pallas import tpu as pltpu


# --------------------------------------------------------------------------
# Kernels
# --------------------------------------------------------------------------
def _relu_cast(h_f32, target_dtype):
    """ReLU + cast of the (TM, TF) hidden intermediate.

    For 16-bit operand dtypes the cast happens first so the max runs on the
    packed dtype (halves vreg / load-store pressure on v6e/v7x); numerically
    identical to max-then-cast for ReLU.  f32 keeps the plain order.
    """
    if jnp.dtype(target_dtype).itemsize == 2:
        return jnp.maximum(h_f32.astype(target_dtype),
                           jnp.asarray(0, target_dtype))
    return jnp.maximum(h_f32, 0.0).astype(target_dtype)


def _ffn_kernel_resident(x_ref, w1_ref, b1_ref, w2_ref, b2_ref, o_ref):
    # x_ref: (TM, D) blocked; w1_ref: (D, d_ff), b1_ref: (1, d_ff),
    # w2_ref: (d_ff, D), b2_ref: (1, D) all fully VMEM-resident (single copy).
    h = jnp.dot(x_ref[...], w1_ref[...], preferred_element_type=jnp.float32)
    h = h + b1_ref[...].astype(jnp.float32)
    h = _relu_cast(h, w2_ref.dtype)
    y = jnp.dot(h, w2_ref[...], preferred_element_type=jnp.float32)
    # TODO(synk): training-mode dropout (p=0.1) not applied (eval identity);
    # would need pltpu.prng_seed + pltpu.prng_random_bits masking here.
    o_ref[...] = (y + b2_ref[...].astype(jnp.float32)).astype(o_ref.dtype)


def _ffn_kernel_streamed(x_ref, w1_ref, b1_ref, w2_ref, b2_ref, o_ref,
                         acc_ref):
    # x_ref: (TM, D)      w1_ref: (D, TF)   b1_ref: (1, TF)
    # w2_ref: (TF, D)     b2_ref: (1, D)
    # o_ref:  (TM, D)     acc_ref: (TM, D) f32 scratch
    k = pl.program_id(1)

    @pl.when(k == 0)
    def _():
        # Initialize the accumulator with the broadcast output bias so b2 is
        # added exactly once, with no extra full-tile VPU pass at the end.
        acc_ref[...] = jnp.broadcast_to(
            b2_ref[...].astype(jnp.float32), acc_ref.shape)

    # First linear chunk + ReLU: native-dtype operands on the MXU, f32 math
    # only on the accumulator / bias.
    h = jnp.dot(x_ref[...], w1_ref[...], preferred_element_type=jnp.float32)
    h = h + b1_ref[...].astype(jnp.float32)
    h = _relu_cast(h, w2_ref.dtype)

    # Second linear chunk, accumulated over the d_ff reduction axis.
    acc_ref[...] += jnp.dot(h, w2_ref[...],
                            preferred_element_type=jnp.float32)

    @pl.when(k == pl.num_programs(1) - 1)
    def _():
        # TODO(synk): training-mode dropout (p=0.1) not applied (eval identity).
        o_ref[...] = acc_ref[...].astype(o_ref.dtype)


# --------------------------------------------------------------------------
# Tiling / footprint helpers
# --------------------------------------------------------------------------
def _round_up(v, a):
    return ((v + a - 1) // a) * a


def _pick_tile(dim, preferred, aligns=(256, 128)):
    """Largest aligned tile <= preferred that divides dim, else dim.

    Tries 256-aligned divisors first (full-width passes on the 256x256 MXU of
    v6e/v7x), then 128-aligned ones (v5e / odd shapes)."""
    if dim <= preferred:
        return dim
    for align in aligns:
        t = (min(preferred, dim) // align) * align
        while t >= align:
            if dim % t == 0:
                return t
            t -= align
    return dim


def _resident_footprint(TM, D, d_ff, x_it, w_it, o_it):
    fp = 2 * D * d_ff * w_it          # w1 + w2, single (unblocked) VMEM copy
    fp += (d_ff + D) * w_it           # biases
    fp += 2 * TM * D * x_it           # x tile (double-buffered)
    fp += 2 * TM * D * o_it           # out tile (double-buffered)
    fp += TM * d_ff * (4 + w_it)      # h intermediate (f32 + packed cast)
    fp += TM * D * 4                  # y f32 intermediate before final cast
    return fp


def _streamed_footprint(TM, TF, D, x_it, w_it, o_it):
    fp = 2 * TM * D * x_it            # x tile (double-buffered)
    fp += 2 * TM * D * o_it           # out tile (double-buffered)
    fp += 2 * 2 * D * TF * w_it       # w1 + w2 chunks (double-buffered)
    fp += 2 * (TF + D) * w_it         # bias chunks
    fp += TM * D * 4                  # f32 accumulator scratch
    fp += TM * TF * (4 + w_it)        # h intermediate (f32 + packed cast)
    return fp


# --------------------------------------------------------------------------
# Wrapper
# --------------------------------------------------------------------------
def position_wise_feed_forward(x, w1, b1, w2, b2, *, tm=None, tf=None,
                               compute_dtype=None, weights_resident=None,
                               vmem_budget_bytes=None):
    """x: (B, S, d_model); w1: (d_model, d_ff); b1: (d_ff,);
       w2: (d_ff, d_model); b2: (d_model,).  Returns (B, S, d_model) in
       x's original dtype (eval-mode dropout = identity).

    compute_dtype: optionally cast operands (e.g. jnp.bfloat16) for the MXU;
    accumulation stays f32 in-kernel.  weights_resident: None = auto (based on
    VMEM footprint), True/False to force a path."""
    B, S, D = x.shape
    d_ff = w1.shape[1]
    M = B * S
    out_dtype = x.dtype

    if compute_dtype is not None:
        cd = jnp.dtype(compute_dtype)
        x, w1, b1, w2, b2 = (a.astype(cd) for a in (x, w1, b1, w2, b2))

    x_it = jnp.dtype(x.dtype).itemsize
    w_it = jnp.dtype(w1.dtype).itemsize
    o_it = jnp.dtype(out_dtype).itemsize

    x2d = x.reshape(M, D)
    b1_2d = b1.reshape(1, d_ff)
    b2_2d = b2.reshape(1, D)

    # Sublane alignment: 8 rows for 4-byte dtypes, 16 for 2-byte (bf16).
    row_align = 16 if x_it == 2 else 8
    # Tile-selection budget; conservative vs the 32 MiB default scoped VMEM on
    # v6e/v7x (we always pass an explicit vmem_limit_bytes anyway).
    budget = int(vmem_budget_bytes) if vmem_budget_bytes else (30 << 20)

    flops = 4 * M * D * d_ff
    weight_bytes = 2 * D * d_ff * w_it + (d_ff + D) * w_it

    # ---------------- resident fast path decision ----------------
    use_resident = False
    TM_r = row_align
    if weights_resident is not False:
        tm_pref = tm if tm is not None else 512
        TM_r = max(row_align,
                   (min(tm_pref, _round_up(M, row_align)) // row_align)
                   * row_align)
        while (_resident_footprint(TM_r, D, d_ff, x_it, w_it, o_it) > budget
               and TM_r > row_align):
            TM_r = max(row_align, ((TM_r // 2) // row_align) * row_align)
        fits = _resident_footprint(TM_r, D, d_ff, x_it, w_it, o_it) <= budget
        use_resident = fits or (weights_resident is True)

    if use_resident:
        TM = TM_r
        M_pad = _round_up(M, TM)
        if M_pad != M:
            x2d = jnp.pad(x2d, ((0, M_pad - M), (0, 0)))
        grid = (M_pad // TM,)

        fp = _resident_footprint(TM, D, d_ff, x_it, w_it, o_it)
        vmem_lim = int(min(64 << 20, max(32 << 20, fp + (8 << 20))))
        bytes_accessed = int(M_pad * D * (x_it + o_it) + weight_bytes)
        cost = pl.CostEstimate(flops=int(flops), transcendentals=0,
                               bytes_accessed=bytes_accessed)

        vmem_space = pltpu.MemorySpace.VMEM
        out = pl.pallas_call(
            _ffn_kernel_resident,
            out_shape=jax.ShapeDtypeStruct((M_pad, D), out_dtype),
            grid_spec=pltpu.PrefetchScalarGridSpec(
                num_scalar_prefetch=0,
                grid=grid,
                in_specs=[
                    pl.BlockSpec((TM, D), lambda i: (i, 0)),     # x tile
                    pl.BlockSpec(memory_space=vmem_space),       # w1 resident
                    pl.BlockSpec(memory_space=vmem_space),       # b1 resident
                    pl.BlockSpec(memory_space=vmem_space),       # w2 resident
                    pl.BlockSpec(memory_space=vmem_space),       # b2 resident
                ],
                out_specs=pl.BlockSpec((TM, D), lambda i: (i, 0)),
            ),
            compiler_params=pltpu.CompilerParams(
                dimension_semantics=("parallel",),
                vmem_limit_bytes=vmem_lim),
            cost_estimate=cost,
        )(x2d, w1, b1_2d, w2, b2_2d)
        return out[:M].reshape(B, S, D)

    # ---------------- streamed path ----------------
    tm_pref = tm if tm is not None else 1024      # large TM amortises weight
    tf_pref = tf if tf is not None else 1024      # re-streaming (v6e)
    TM = max(row_align,
             (min(tm_pref, _round_up(M, row_align)) // row_align) * row_align)
    TF = _pick_tile(d_ff, tf_pref)

    # Footprint-driven shrink: TF first (TM carries arithmetic intensity).
    while _streamed_footprint(TM, TF, D, x_it, w_it, o_it) > budget:
        if TF > 128:
            new_TF = _pick_tile(d_ff, TF // 2)
            if new_TF < TF:
                TF = new_TF
                continue
        new_TM = max(row_align, ((TM // 2) // row_align) * row_align)
        if new_TM == TM:
            break
        TM = new_TM

    M_pad = _round_up(M, TM)
    if M_pad != M:
        x2d = jnp.pad(x2d, ((0, M_pad - M), (0, 0)))
    grid_m = M_pad // TM
    grid = (grid_m, d_ff // TF)

    fp = _streamed_footprint(TM, TF, D, x_it, w_it, o_it)
    vmem_lim = int(min(64 << 20, max(32 << 20, fp + (8 << 20))))
    # Weights are re-streamed from HBM once per token tile (inherent to the
    # streamed path since the reduction axis must be the inner grid axis).
    bytes_accessed = int(M_pad * D * (x_it + o_it) + weight_bytes * grid_m)
    cost = pl.CostEstimate(flops=int(flops), transcendentals=0,
                           bytes_accessed=bytes_accessed)

    out = pl.pallas_call(
        _ffn_kernel_streamed,
        out_shape=jax.ShapeDtypeStruct((M_pad, D), out_dtype),
        grid_spec=pltpu.PrefetchScalarGridSpec(
            num_scalar_prefetch=0,
            grid=grid,
            in_specs=[
                pl.BlockSpec((TM, D), lambda i, k: (i, 0)),     # x tile
                # If DMA is exposed at tile transitions and VMEM headroom
                # exists (v5e/v6e, moderate D), pipeline_mode=pl.Buffered(3)
                # on the two weight specs below hides the k=0 latency spike.
                pl.BlockSpec((D, TF), lambda i, k: (0, k)),     # w1 chunk
                pl.BlockSpec((1, TF), lambda i, k: (0, k)),     # b1 chunk
                pl.BlockSpec((TF, D), lambda i, k: (k, 0)),     # w2 chunk
                pl.BlockSpec((1, D), lambda i, k: (0, 0)),      # b2
            ],
            out_specs=pl.BlockSpec((TM, D), lambda i, k: (i, 0)),
            scratch_shapes=[pltpu.VMEM((TM, D), jnp.float32)],
        ),
        compiler_params=pltpu.CompilerParams(
            # Token axis parallel (2 TCs on v7x); d_ff reduction arbitrary.
            dimension_semantics=("parallel", "arbitrary"),
            vmem_limit_bytes=vmem_lim),
        cost_estimate=cost,
    )(x2d, w1, b1_2d, w2, b2_2d)
    return out[:M].reshape(B, S, D)


def init_ffn_params(key, d_model, d_ff, dtype=jnp.float32):
    """PyTorch-style Linear init: U(-1/sqrt(fan_in), 1/sqrt(fan_in))."""
    k1, k2, k3, k4 = jax.random.split(key, 4)
    bound1 = 1.0 / (d_model ** 0.5)
    bound2 = 1.0 / (d_ff ** 0.5)
    # Stored as (in, out) so the kernel does x @ W (== x @ W_torch.T).
    w1 = jax.random.uniform(k1, (d_model, d_ff), dtype, -bound1, bound1)
    b1 = jax.random.uniform(k2, (d_ff,), dtype, -bound1, bound1)
    w2 = jax.random.uniform(k3, (d_ff, d_model), dtype, -bound2, bound2)
    b2 = jax.random.uniform(k4, (d_model,), dtype, -bound2, bound2)
    return w1, b1, w2, b2


if __name__ == "__main__":
    key = jax.random.PRNGKey(0)
    kx, kp = jax.random.split(key)

    # Small but TPU-aligned shapes.
    B, S, d_model, d_ff = 2, 64, 128, 512
    x = jax.random.normal(kx, (B, S, d_model), jnp.float32)
    w1, b1, w2, b2 = init_ffn_params(kp, d_model, d_ff)

    # Pure-JAX reference (eval-mode dropout = identity).
    y_ref = jnp.maximum(x @ w1 + b1, 0.0) @ w2 + b2

    # 1) Default / auto path: weights easily fit VMEM -> resident fast path.
    y_res = jax.block_until_ready(position_wise_feed_forward(x, w1, b1, w2, b2))
    assert y_res.shape == (B, S, d_model)
    assert jnp.allclose(y_res, y_ref, atol=1e-4, rtol=1e-4)

    # 2) Forced streamed path: exercises the (token, d_ff) grid, accumulator
    #    init/finalize and the d_ff reduction.
    y_str = jax.block_until_ready(
        position_wise_feed_forward(x, w1, b1, w2, b2, tm=64, tf=256,
                                   weights_resident=False))
    assert y_str.shape == (B, S, d_model)
    assert jnp.allclose(y_str, y_ref, atol=1e-4, rtol=1e-4)

    # 3) bf16 compute path (wrapper casts f32 params; f32 accumulation kept).
    y_bf = jax.block_until_ready(
        position_wise_feed_forward(x, w1, b1, w2, b2,
                                   compute_dtype=jnp.bfloat16))
    assert y_bf.shape == (B, S, d_model)
    assert jnp.allclose(y_bf, y_ref, atol=1e-1, rtol=1e-1)

    print("KERNEL_OK")
</pallas_src>

<mosaic_0001>
module attributes {stable_mosaic.version = 11 : i64} {
  func.func @_ffn_kernel_resident(%arg0: i32, %arg1: memref<128x128xf32, #tpu.memory_space<vmem>>, %arg2: memref<128x512xf32, #tpu.memory_space<vmem>>, %arg3: memref<1x512xf32, #tpu.memory_space<vmem>>, %arg4: memref<512x128xf32, #tpu.memory_space<vmem>>, %arg5: memref<1x128xf32, #tpu.memory_space<vmem>>, %arg6: memref<128x128xf32, #tpu.memory_space<vmem>>) attributes {dimension_semantics = [#tpu.dimension_semantics<parallel>], iteration_bounds = array<i64: 1>, scalar_prefetch = 0 : i64, scratch_operands = 0 : i64, tpu.core_type = #tpu.core_type<tc>, window_params = [{transform_indices = @transform_0, window_bounds = array<i64: 128, 128>}, {pipeline_mode = #tpu.pipeline_mode<synchronous>, transform_indices = @transform_1, window_bounds = array<i64: 128, 512>}, {pipeline_mode = #tpu.pipeline_mode<synchronous>, transform_indices = @transform_2, window_bounds = array<i64: 1, 512>}, {pipeline_mode = #tpu.pipeline_mode<synchronous>, transform_indices = @transform_3, window_bounds = array<i64: 512, 128>}, {pipeline_mode = #tpu.pipeline_mode<synchronous>, transform_indices = @transform_4, window_bounds = array<i64: 1, 128>}, {transform_indices = @transform_5, window_bounds = array<i64: 128, 128>}]} {
    %c0 = arith.constant 0 : index
    %c0_0 = arith.constant 0 : index
    %0 = vector.load %arg1[%c0, %c0_0] : memref<128x128xf32, #tpu.memory_space<vmem>>, vector<128x128xf32>
    %c0_1 = arith.constant 0 : index
    %c0_2 = arith.constant 0 : index
    %1 = vector.load %arg2[%c0_1, %c0_2] : memref<128x512xf32, #tpu.memory_space<vmem>>, vector<128x512xf32>
    %cst = arith.constant dense<0.000000e+00> : vector<128x512xf32>
    %2 = tpu.matmul %0, %1, %cst {dimension_numbers = #tpu.dot_dimension_numbers<[1], [0], [0], [1], [0, 0, 1, 1], [], []>} : vector<128x128xf32>, vector<128x512xf32>, vector<128x512xf32> -> vector<128x512xf32>
    %c0_3 = arith.constant 0 : index
    %c0_4 = arith.constant 0 : index
    %3 = vector.load %arg3[%c0_3, %c0_4] : memref<1x512xf32, #tpu.memory_space<vmem>>, vector<1x512xf32>
    %4 = vector.broadcast %3 : vector<1x512xf32> to vector<128x512xf32>
    %5 = arith.addf %2, %4 : vector<128x512xf32>
    %cst_5 = arith.constant 0.000000e+00 : f32
    %6 = vector.broadcast %cst_5 : f32 to vector<128x512xf32>
    %7 = arith.maximumf %5, %6 : vector<128x512xf32>
    %c0_6 = arith.constant 0 : index
    %c0_7 = arith.constant 0 : index
    %8 = vector.load %arg4[%c0_6, %c0_7] : memref<512x128xf32, #tpu.memory_space<vmem>>, vector<512x128xf32>
    %cst_8 = arith.constant dense<0.000000e+00> : vector<128x128xf32>
    %9 = tpu.matmul %7, %8, %cst_8 {dimension_numbers = #tpu.dot_dimension_numbers<[1], [0], [0], [1], [0, 0, 1, 1], [], []>} : vector<128x512xf32>, vector<512x128xf32>, vector<128x128xf32> -> vector<128x128xf32>
    %c0_9 = arith.constant 0 : index
    %c0_10 = arith.constant 0 : index
    %10 = vector.load %arg5[%c0_9, %c0_10] : memref<1x128xf32, #tpu.memory_space<vmem>>, vector<1x128xf32>
    %11 = vector.broadcast %10 : vector<1x128xf32> to vector<128x128xf32>
    %12 = arith.addf %9, %11 : vector<128x128xf32>
    %c0_11 = arith.constant 0 : index
    %c0_12 = arith.constant 0 : index
    %13 = vector.load %arg6[%c0_11, %c0_12] : memref<128x128xf32, #tpu.memory_space<vmem>>, vector<128x128xf32>
    tpu.vector_store %arg6[%c0_11, %c0_12], %12 {strides = array<i32>} : memref<128x128xf32, #tpu.memory_space<vmem>>, vector<128x128xf32>,
    return
  }
  func.func @transform_0(%arg0: i32) -> (i32, i32) {
    %c0_i32 = arith.constant 0 : i32
    %c0_i32_0 = arith.constant 0 : i32
    return %arg0, %c0_i32 : i32, i32
  }
  func.func @transform_1(%arg0: i32) -> (i32, i32) {
    %c0_i32 = arith.constant 0 : i32
    %c0_i32_0 = arith.constant 0 : i32
    %c0_i32_1 = arith.constant 0 : i32
    return %c0_i32, %c0_i32_0 : i32, i32
  }
  func.func @transform_2(%arg0: i32) -> (i32, i32) {
    %c0_i32 = arith.constant 0 : i32
    %c0_i32_0 = arith.constant 0 : i32
    %c0_i32_1 = arith.constant 0 : i32
    return %c0_i32, %c0_i32_0 : i32, i32
  }
  func.func @transform_3(%arg0: i32) -> (i32, i32) {
    %c0_i32 = arith.constant 0 : i32
    %c0_i32_0 = arith.constant 0 : i32
    %c0_i32_1 = arith.constant 0 : i32
    return %c0_i32, %c0_i32_0 : i32, i32
  }
  func.func @transform_4(%arg0: i32) -> (i32, i32) {
    %c0_i32 = arith.constant 0 : i32
    %c0_i32_0 = arith.constant 0 : i32
    %c0_i32_1 = arith.constant 0 : i32
    return %c0_i32, %c0_i32_0 : i32, i32
  }
  func.func @transform_5(%arg0: i32) -> (i32, i32) {
    %c0_i32 = arith.constant 0 : i32
    %c0_i32_0 = arith.constant 0 : i32
    return %arg0, %c0_i32 : i32, i32
  }
}

</mosaic_0001>

<bundles_post_ra>
// kernel: tpu_custom_call.1
= control target key start
LH: loop header
LB: loop body
LE: loop exit
PB: predicated region body
PF: predicated region fallthrough
CT: control target
= control target key end

     0   :  { %10 = vsyncpa [#allocation3], 0  ;;  %s1155_s0 = inlined_call_operand.hbm [shape: f32[128,128], index: 0, kind: input, shape index: {}]   ;;  %s1156_s1 = inlined_call_operand.hbm [shape: f32[128,512], index: 1, kind: input, shape index: {}]   ;;  %s1157_s2 = inlined_call_operand.hbm [shape: f32[1,512], index: 2, kind: input, shape index: {}]   ;;  %s1158_s3 = inlined_call_operand.hbm [shape: f32[512,128], index: 3, kind: input, shape index: {}]   ;;  %s1159_s4 = inlined_call_operand.vmem [shape: f32[1,128], index: 4, kind: input, shape index: {}]   ;;  %s1160_s5 = inlined_call_operand.hbm [shape: f32[128,128], index: 5, kind: output, shape index: {}]  }
   0x1   :  { %11 = vsyncpa [#allocation6], 0 }
   0x2   :  { %12 = vsyncpa [#allocation9], 0  ;;  %s31_s20 = sshll.u32 %s1156_s1, 4  ;;  %s32_s20 = int_to_ptr.hbm [resolvable:$true] %s31_s20 }
   0x3   :  { %13 = vsyncpa [#allocation4], 0  ;;  %s999_s21 = smov [#allocation5]   ;;  %s18_s25 = sshll.u32 %s1155_s0, 4  ;;  %s19_s25 = int_to_ptr.hbm [resolvable:$true] %s18_s25 }
   0x4   :  { %s33_s22 = sshll.u32 %s999_s21, 4  ;;  %s1000_s26 = smov 512   ;;  %s34_s22 = int_to_ptr.vmem [resolvable:$true] %s33_s22 }
   0x5   :  { %s1001_s27 = smov 32   ;;  %s1002_s28 = smov [#allocation2]  }
   0x6   :  { %39 = dma.hbm_to_vmem [thread:$0]  %s32_s20, 8192, %s34_s22, [#allocation6], %s1000_s26, %s1000_s26, %s1001_s27  }
   0x7   :  { %s20_s29 = sshll.u32 %s1002_s28, 4  ;;  %s1003_s30 = smov 128   ;;  %s21_s29 = int_to_ptr.vmem [resolvable:$true] %s20_s29 }
   0x8   :  { %s1004_s6 = smov 8   ;;  %s45_s8 = sshll.u32 %s1157_s2, 4  ;;  %s46_s8 = int_to_ptr.hbm [resolvable:$true] %s45_s8 }
   0x9   :  { %26 = dma.hbm_to_vmem [thread:$0]  %s19_s25, 2048, %s21_s29, [#allocation3], %s1003_s30, %s1003_s30, %s1004_s6  }
   0xa   :  { %s1005_s9 = smov [#allocation7]   ;;  %s55_s12 = sshll.u32 %s1158_s3, 4  ;;  %s56_s12 = int_to_ptr.hbm [resolvable:$true] %s55_s12 }
   0xb   :  { %s47_s0 = sshll.u32 %s1005_s9, 4  ;;  %s1006_s13 = smov [#allocation8]   ;;  %s48_s0 = int_to_ptr.vmem [resolvable:$true] %s47_s0 }
   0xc   :  { %50 = dma.hbm_to_vmem [thread:$0]  %s46_s8, 64, %s48_s0, [#allocation6]  }
   0xd   :  { %s57_s14 = sshll.u32 %s1006_s13, 4  ;;  %s58_s14 = int_to_ptr.vmem [resolvable:$true] %s57_s14 }
   0xe   :  { %63 = dma.hbm_to_vmem [thread:$0]  %s56_s12, 8192, %s58_s14, [#allocation9], %s1003_s30, %s1003_s30, %s1004_s6  }
   0xf   :  { %991 = dma.done.wait [#allocation3], 2048  }
  0x10   :  { %992 = vsyncadd [#allocation3], 4294965248 }
  0x11   :  { %993 = dma.done.wait [#allocation6], 8256  }
  0x12   :  { %994 = vsyncadd [#allocation6], 4294959040 }
  0x13   :  { %995 = dma.done.wait [#allocation9], 8192  }
  0x14   :  { %996 = vsyncadd [#allocation9], 4294959104  ;;  %v160_v0 = vld [vmem:[#allocation5 + $0x1f0] sm:$0xff]  ;;  %v161_v2 = vld [vmem:[#allocation5 + $0x1f8] sm:$0xff]  ;;  %s846_s18 = sshll.u32 %s1160_s5, 4  ;;  %s847_s18 = int_to_ptr.hbm [resolvable:$true] %s846_s18 }
  0x15   :  { %v156_v1 = vld [vmem:[#allocation5 + $0x1d0] sm:$0xff]  ;;  %302 = vmatpush.msra.mxu2 %v160_v0  ;;  %367 = vmatpush.msra.mxu3 %v161_v2  ;;  %v157_v3 = vld [vmem:[#allocation5 + $0x1d8] sm:$0xff]  ;;  %v158_v6 = vld [vmem:[#allocation5 + $0x1e0] sm:$0xff] }
  0x16   :  { %v152_v4 = vld [vmem:[#allocation5 + $0x1b0] sm:$0xff]  ;;  %v153_v5 = vld [vmem:[#allocation5 + $0x1b8] sm:$0xff]  ;;  %v154_v7 = vld [vmem:[#allocation5 + $0x1c0] sm:$0xff]  ;;  %172 = vmatpush.msra.mxu0 %v158_v6 }
  0x17   :  { %303 = vmatpush.msra.mxu2 %v156_v1  ;;  %368 = vmatpush.msra.mxu3 %v157_v3  ;;  %v159_v8 = vld [vmem:[#allocation5 + $0x1e8] sm:$0xff]  ;;  %v148_v9 = vld [vmem:[#allocation5 + $0x190] sm:$0xff]  ;;  %v149_v10 = vld [vmem:[#allocation5 + $0x198] sm:$0xff] }
  0x18   :  { %237 = vmatpush.msra.mxu1 %v159_v8  ;;  %v150_v11 = vld [vmem:[#allocation5 + $0x1a0] sm:$0xff]  ;;  %v155_v12 = vld [vmem:[#allocation5 + $0x1c8] sm:$0xff]  ;;  %v144_v13 = vld [vmem:[#allocation5 + $0x170] sm:$0xff]  ;;  %173 = vmatpush.msra.mxu0 %v154_v7 }
  0x19   :  { %304 = vmatpush.msra.mxu2 %v152_v4  ;;  %369 = vmatpush.msra.mxu3 %v153_v5  ;;  %v145_v14 = vld [vmem:[#allocation5 + $0x178] sm:$0xff]  ;;  %v151_v15 = vld [vmem:[#allocation5 + $0x1a8] sm:$0xff]  ;;  %v146_v16 = vld [vmem:[#allocation5 + $0x180] sm:$0xff] }
  0x1a   :  { %238 = vmatpush.msra.mxu1 %v155_v12  ;;  %v147_v17 = vld [vmem:[#allocation5 + $0x188] sm:$0xff]  ;;  %v140_v18 = vld [vmem:[#allocation5 + $0x150] sm:$0xff]  ;;  %174 = vmatpush.msra.mxu0 %v150_v11  ;;  %v141_v19 = vld [vmem:[#allocation5 + $0x158] sm:$0xff] }
  0x1b   :  { %305 = vmatpush.msra.mxu2 %v148_v9  ;;  %370 = vmatpush.msra.mxu3 %v149_v10  ;;  %v142_v20 = vld [vmem:[#allocation5 + $0x160] sm:$0xff]  ;;  %v143_v21 = vld [vmem:[#allocation5 + $0x168] sm:$0xff]  ;;  %v136_v22 = vld [vmem:[#allocation5 + $0x130] sm:$0xff] }
  0x1c   :  { %239 = vmatpush.msra.mxu1 %v151_v15  ;;  %175 = vmatpush.msra.mxu0 %v146_v16  ;;  %v137_v23 = vld [vmem:[#allocation5 + $0x138] sm:$0xff]  ;;  %v138_v24 = vld [vmem:[#allocation5 + $0x140] sm:$0xff]  ;;  %v139_v25 = vld [vmem:[#allocation5 + $0x148] sm:$0xff] }
  0x1d   :  { %306 = vmatpush.msra.mxu2 %v144_v13  ;;  %371 = vmatpush.msra.mxu3 %v145_v14  ;;  %v132_v26 = vld [vmem:[#allocation5 + $0x110] sm:$0xff]  ;;  %v133_v27 = vld [vmem:[#allocation5 + $0x118] sm:$0xff]  ;;  %v134_v28 = vld [vmem:[#allocation5 + $0x120] sm:$0xff] }
  0x1e   :  { %240 = vmatpush.msra.mxu1 %v147_v17  ;;  %176 = vmatpush.msra.mxu0 %v142_v20  ;;  %v135_v29 = vld [vmem:[#allocation5 + $0x128] sm:$0xff]  ;;  %v128_v30 = vld [vmem:[#allocation5 + $0xf0] sm:$0xff]  ;;  %v129_v31 = vld [vmem:[#allocation5 + $0xf8] sm:$0xff] }
  0x1f   :  { %307 = vmatpush.msra.mxu2 %v140_v18  ;;  %372 = vmatpush.msra.mxu3 %v141_v19  ;;  %v130_v32 = vld [vmem:[#allocation5 + $0x100] sm:$0xff]  ;;  %v131_v33 = vld [vmem:[#allocation5 + $0x108] sm:$0xff]  ;;  %v124_v34 = vld [vmem:[#allocation5 + $0xd0] sm:$0xff] }
  0x20   :  { %241 = vmatpush.msra.mxu1 %v143_v21  ;;  %177 = vmatpush.msra.mxu0 %v138_v24  ;;  %v125_v35 = vld [vmem:[#allocation5 + $0xd8] sm:$0xff]  ;;  %v126_v36 = vld [vmem:[#allocation5 + $0xe0] sm:$0xff]  ;;  %v127_v37 = vld [vmem:[#allocation5 + $0xe8] sm:$0xff] }
  0x21   :  { %308 = vmatpush.msra.mxu2 %v136_v22  ;;  %373 = vmatpush.msra.mxu3 %v137_v23  ;;  %v120_v38 = vld [vmem:[#allocation5 + $0xb0] sm:$0xff]  ;;  %v121_v39 = vld [vmem:[#allocation5 + $0xb8] sm:$0xff]  ;;  %v122_v40 = vld [vmem:[#allocation5 + $0xc0] sm:$0xff] }
  0x22   :  { %242 = vmatpush.msra.mxu1 %v139_v25  ;;  %178 = vmatpush.msra.mxu0 %v134_v28  ;;  %v123_v41 = vld [vmem:[#allocation5 + $0xc8] sm:$0xff]  ;;  %v116_v42 = vld [vmem:[#allocation5 + $0x90] sm:$0xff]  ;;  %v117_v43 = vld [vmem:[#allocation5 + $0x98] sm:$0xff] }
  0x23   :  { %309 = vmatpush.msra.mxu2 %v132_v26  ;;  %374 = vmatpush.msra.mxu3 %v133_v27  ;;  %v118_v44 = vld [vmem:[#allocation5 + $0xa0] sm:$0xff]  ;;  %v119_v45 = vld [vmem:[#allocation5 + $0xa8] sm:$0xff]  ;;  %v112_v46 = vld [vmem:[#allocation5 + $0x70] sm:$0xff] }
  0x24   :  { %243 = vmatpush.msra.mxu1 %v135_v29  ;;  %179 = vmatpush.msra.mxu0 %v130_v32  ;;  %v113_v47 = vld [vmem:[#allocation5 + $0x78] sm:$0xff]  ;;  %v114_v48 = vld [vmem:[#allocation5 + $0x80] sm:$0xff]  ;;  %v115_v49 = vld [vmem:[#allocation5 + $0x88] sm:$0xff] }
  0x25   :  { %310 = vmatpush.msra.mxu2 %v128_v30  ;;  %375 = vmatpush.msra.mxu3 %v129_v31  ;;  %v108_v50 = vld [vmem:[#allocation5 + $0x50] sm:$0xff]  ;;  %v109_v51 = vld [vmem:[#allocation5 + $0x58] sm:$0xff]  ;;  %v110_v52 = vld [vmem:[#allocation5 + $0x60] sm:$0xff] }
  0x26   :  { %244 = vmatpush.msra.mxu1 %v131_v33  ;;  %180 = vmatpush.msra.mxu0 %v126_v36  ;;  %v111_v53 = vld [vmem:[#allocation5 + $0x68] sm:$0xff]  ;;  %v104_v54 = vld [vmem:[#allocation5 + $0x30] sm:$0xff]  ;;  %v105_v55 = vld [vmem:[#allocation5 + $0x38] sm:$0xff] }
  0x27   :  { %311 = vmatpush.msra.mxu2 %v124_v34  ;;  %376 = vmatpush.msra.mxu3 %v125_v35  ;;  %v106_v56 = vld [vmem:[#allocation5 + $0x40] sm:$0xff]  ;;  %v107_v57 = vld [vmem:[#allocation5 + $0x48] sm:$0xff]  ;;  %v100_v58 = vld [vmem:[#allocation5 + $0x10] sm:$0xff] }
  0x28   :  { %245 = vmatpush.msra.mxu1 %v127_v37  ;;  %181 = vmatpush.msra.mxu0 %v122_v40  ;;  %v101_v59 = vld [vmem:[#allocation5 + $0x18] sm:$0xff]  ;;  %v82_v60 = vld [vmem:[#allocation2] sm:$0xff]  ;;  %v103_v62 = vld [vmem:[#allocation5 + $0x28] sm:$0xff] }
  0x29   :  { %312 = vmatpush.msra.mxu2 %v120_v38  ;;  %377 = vmatpush.msra.mxu3 %v121_v39  ;;  %v102_v61 = vld [vmem:[#allocation5 + $0x20] sm:$0xff]  ;;  %v99_v2 = vld [vmem:[#allocation5 + $0x8] sm:$0xff]  ;;  %v542_v5 = vld [vmem:[#allocation8 + $0x170] sm:$0xff] }
  0x2a   :  { %246 = vmatpush.msra.mxu1 %v123_v41  ;;  %182 = vmatpush.msra.mxu0 %v118_v44  ;;  %v543_v63 = vld [vmem:[#allocation8 + $0x178] sm:$0xff]  ;;  %v558_v6 = vld [vmem:[#allocation8 + $0x1f0] sm:$0xff]  ;;  %v83_v9 = vld [vmem:[#allocation2 + $0x8] sm:$0xff] }
  0x2b   :  { %313 = vmatpush.msra.mxu2 %v116_v42  ;;  %378 = vmatpush.msra.mxu3 %v117_v43  ;;  %v559_v0 = vld [vmem:[#allocation8 + $0x1f8] sm:$0xff]  ;;  %v510_v7 = vld [vmem:[#allocation8 + $0x70] sm:$0xff]  ;;  %v541_v10 = vld [vmem:[#allocation8 + $0x168] sm:$0xff] }
  0x2c   :  { %247 = vmatpush.msra.mxu1 %v119_v45  ;;  %183 = vmatpush.msra.mxu0 %v114_v48  ;;  %v98_v1 = vld [vmem:[#allocation5] sm:$0xff]  ;;  %v526_v8 = vld [vmem:[#allocation8 + $0xf0] sm:$0xff]  ;;  %v509_v11 = vld [vmem:[#allocation8 + $0x68] sm:$0xff] }
  0x2d   :  { %314 = vmatpush.msra.mxu2 %v112_v46  ;;  %379 = vmatpush.msra.mxu3 %v113_v47  ;;  %v511_v3 = vld [vmem:[#allocation8 + $0x78] sm:$0xff]  ;;  %v557_v12 = vld [vmem:[#allocation8 + $0x1e8] sm:$0xff]  ;;  %v540_v14 = vld [vmem:[#allocation8 + $0x160] sm:$0xff] }
  0x2e   :  { %248 = vmatpush.msra.mxu1 %v115_v49  ;;  %184 = vmatpush.msra.mxu0 %v110_v52  ;;  %v527_v4 = vld [vmem:[#allocation8 + $0xf8] sm:$0xff]  ;;  %v525_v13 = vld [vmem:[#allocation8 + $0xe8] sm:$0xff]  ;;  %v508_v15 = vld [vmem:[#allocation8 + $0x60] sm:$0xff] }
  0x2f   :  { %315 = vmatpush.msra.mxu2 %v108_v50  ;;  %380 = vmatpush.msra.mxu3 %v109_v51  ;;  %v556_v16 = vld [vmem:[#allocation8 + $0x1e0] sm:$0xff]  ;;  %v539_v18 = vld [vmem:[#allocation8 + $0x158] sm:$0xff]  ;;  %v84_v22 = vld [vmem:[#allocation2 + $0x10] sm:$0xff] }
  0x30   :  { %249 = vmatpush.msra.mxu1 %v111_v53  ;;  %185 = vmatpush.msra.mxu0 %v106_v56  ;;  %v524_v17 = vld [vmem:[#allocation8 + $0xe0] sm:$0xff]  ;;  %v507_v19 = vld [vmem:[#allocation8 + $0x58] sm:$0xff]  ;;  %v538_v23 = vld [vmem:[#allocation8 + $0x150] sm:$0xff] }
  0x31   :  { %316 = vmatpush.msra.mxu2 %v104_v54  ;;  %381 = vmatpush.msra.mxu3 %v105_v55  ;;  %v555_v20 = vld [vmem:[#allocation8 + $0x1d8] sm:$0xff]  ;;  %v506_v24 = vld [vmem:[#allocation8 + $0x50] sm:$0xff]  ;;  %v537_v28 = vld [vmem:[#allocation8 + $0x148] sm:$0xff] }
  0x32   :  { %250 = vmatpush.msra.mxu1 %v107_v57  ;;  %186 = vmatpush.msra.mxu0 %v102_v61  ;;  %v523_v21 = vld [vmem:[#allocation8 + $0xd8] sm:$0xff]  ;;  %v554_v25 = vld [vmem:[#allocation8 + $0x1d0] sm:$0xff]  ;;  %v505_v29 = vld [vmem:[#allocation8 + $0x48] sm:$0xff] }
  0x33   :  { %317 = vmatpush.msra.mxu2 %v100_v58  ;;  %382 = vmatpush.msra.mxu3 %v101_v59  ;;  %v522_v26 = vld [vmem:[#allocation8 + $0xd0] sm:$0xff]  ;;  %v553_v30 = vld [vmem:[#allocation8 + $0x1c8] sm:$0xff]  ;;  %v86_v32 = vld [vmem:[#allocation2 + $0x20] sm:$0xff] }
  0x34   :  { %318 = vmatmul.f32.vlgmr.msra.gmra.mxu2 %v82_v60  ;;  %383 = vmatmul.f32.vlgmr.msra.gmra.mxu3 %v82_v60  ;;  %v85_v27 = vld [vmem:[#allocation2 + $0x18] sm:$0xff]  ;;  %v521_v31 = vld [vmem:[#allocation8 + $0xc8] sm:$0xff]  ;;  %v536_v33 = vld [vmem:[#allocation8 + $0x140] sm:$0xff] }
  0x35   :  { %251 = vmatpush.msra.mxu1 %v103_v62  ;;  %694 = vmatpush.msrb.mxu2 %v543_v63  ;;  %v504_v34 = vld [vmem:[#allocation8 + $0x40] sm:$0xff]  ;;  %v535_v38 = vld [vmem:[#allocation8 + $0x138] sm:$0xff]  ;;  %v88_v42 = vld [vmem:[#allocation2 + $0x30] sm:$0xff] }
  0x36   :  { %759 = vmatpush.msrb.mxu3 %v559_v0  ;;  %187 = vmatpush.msra.mxu0 %v98_v1  ;;  %v552_v35 = vld [vmem:[#allocation8 + $0x1c0] sm:$0xff]  ;;  %v503_v39 = vld [vmem:[#allocation8 + $0x38] sm:$0xff]  ;;  %v534_v43 = vld [vmem:[#allocation8 + $0x130] sm:$0xff] }
  0x37   :  { %252 = vmatpush.msra.mxu1 %v99_v2  ;;  %188 = vmatmul.f32.vlgmr.msra.gmra.mxu0 %v82_v60  ;;  %v520_v36 = vld [vmem:[#allocation8 + $0xc0] sm:$0xff]  ;;  %v551_v40 = vld [vmem:[#allocation8 + $0x1b8] sm:$0xff]  ;;  %v502_v44 = vld [vmem:[#allocation8 + $0x30] sm:$0xff] }
  0x38   :  { %253 = vmatmul.f32.vlgmr.msra.gmra.mxu1 %v82_v60  ;;  %564 = vmatpush.msrb.mxu0 %v511_v3  ;;  %v87_v37 = vld [vmem:[#allocation2 + $0x28] sm:$0xff]  ;;  %v519_v41 = vld [vmem:[#allocation8 + $0xb8] sm:$0xff]  ;;  %v550_v45 = vld [vmem:[#allocation8 + $0x1b0] sm:$0xff] }
  0x39   :  { %629 = vmatpush.msrb.mxu1 %v527_v4  ;;  %695 = vmatpush.msrb.mxu2 %v542_v5  ;;  %v518_v46 = vld [vmem:[#allocation8 + $0xb0] sm:$0xff]  ;;  %v533_v48 = vld [vmem:[#allocation8 + $0x128] sm:$0xff]  ;;  %v90_v52 = vld [vmem:[#allocation2 + $0x40] sm:$0xff] }
  0x3a   :  { %760 = vmatpush.msrb.mxu3 %v558_v6  ;;  %565 = vmatpush.msrb.mxu0 %v510_v7  ;;  %v89_v47 = vld [vmem:[#allocation2 + $0x38] sm:$0xff]  ;;  %v501_v49 = vld [vmem:[#allocation8 + $0x28] sm:$0xff]  ;;  %v532_v53 = vld [vmem:[#allocation8 + $0x120] sm:$0xff] }
  0x3b   :  { %630 = vmatpush.msrb.mxu1 %v526_v8  ;;  %696 = vmatpush.msrb.mxu2 %v541_v10  ;;  %v549_v50 = vld [vmem:[#allocation8 + $0x1a8] sm:$0xff]  ;;  %v500_v54 = vld [vmem:[#allocation8 + $0x20] sm:$0xff]  ;;  %v531_v58 = vld [vmem:[#allocation8 + $0x118] sm:$0xff] }
  0x3c   :  { %321 = vmatmul.f32.gmra.mxu2 %v83_v9  ;;  %386 = vmatmul.f32.gmra.mxu3 %v83_v9  ;;  %v517_v51 = vld [vmem:[#allocation8 + $0xa8] sm:$0xff]  ;;  %v548_v55 = vld [vmem:[#allocation8 + $0x1a0] sm:$0xff]  ;;  %v499_v59 = vld [vmem:[#allocation8 + $0x18] sm:$0xff] }
  0x3d   :  { %566 = vmatpush.msrb.mxu0 %v509_v11  ;;  %761 = vmatpush.msrb.mxu3 %v557_v12  ;;  %v516_v56 = vld [vmem:[#allocation8 + $0xa0] sm:$0xff]  ;;  %v547_v60 = vld [vmem:[#allocation8 + $0x198] sm:$0xff]  ;;  %v92_v62 = vld [vmem:[#allocation2 + $0x50] sm:$0xff] }
  0x3e   :  { %631 = vmatpush.msrb.mxu1 %v525_v13  ;;  %697 = vmatpush.msrb.mxu2 %v540_v14  ;;  %v91_v57 = vld [vmem:[#allocation2 + $0x48] sm:$0xff]  ;;  %v515_v61 = vld [vmem:[#allocation8 + $0x98] sm:$0xff]  ;;  %v530_v63 = vld [vmem:[#allocation8 + $0x110] sm:$0xff] }
  0x3f   :  { %567 = vmatpush.msrb.mxu0 %v508_v15  ;;  %762 = vmatpush.msrb.mxu3 %v556_v16  ;;  %v498_v0 = vld [vmem:[#allocation8 + $0x10] sm:$0xff]  ;;  %v529_v4 = vld [vmem:[#allocation8 + $0x108] sm:$0xff]  ;;  %v528_v8 = vld [vmem:[#allocation8 + $0x100] sm:$0xff] }
  0x40   :  { %191 = vmatmul.f32.gmra.mxu0 %v83_v9  ;;  %256 = vmatmul.f32.gmra.mxu1 %v83_v9  ;;  %v546_v1 = vld [vmem:[#allocation8 + $0x190] sm:$0xff]  ;;  %v497_v5 = vld [vmem:[#allocation8 + $0x8] sm:$0xff]  ;;  %v496_v9 = vld [vmem:[#allocation8] sm:$0xff] }
  0x41   :  { %632 = vmatpush.msrb.mxu1 %v524_v17  ;;  %698 = vmatpush.msrb.mxu2 %v539_v18  ;;  %v514_v2 = vld [vmem:[#allocation8 + $0x90] sm:$0xff]  ;;  %v545_v6 = vld [vmem:[#allocation8 + $0x188] sm:$0xff]  ;;  %v544_v10 = vld [vmem:[#allocation8 + $0x180] sm:$0xff] }
  0x42   :  { %568 = vmatpush.msrb.mxu0 %v507_v19  ;;  %763 = vmatpush.msrb.mxu3 %v555_v20  ;;  %v93_v3 = vld [vmem:[#allocation2 + $0x58] sm:$0xff]  ;;  %v513_v7 = vld [vmem:[#allocation8 + $0x88] sm:$0xff]  ;;  %v94_v11 = vld [vmem:[#allocation2 + $0x60] sm:$0xff] }
  0x43   :  { %633 = vmatpush.msrb.mxu1 %v523_v21  ;;  %699 = vmatpush.msrb.mxu2 %v538_v23  ;;  %v95_v12 = vld [vmem:[#allocation2 + $0x68] sm:$0xff]  ;;  %v96_v14 = vld [vmem:[#allocation2 + $0x70] sm:$0xff]  ;;  %v97_v15 = vld [vmem:[#allocation2 + $0x78] sm:$0xff] }
  0x44   :  { %324 = vmatmul.f32.gmra.mxu2 %v84_v22  ;;  %389 = vmatmul.f32.gmra.mxu3 %v84_v22  ;;  %v512_v13 = vld [vmem:[#allocation8 + $0x80] sm:$0xff]  ;;  %v162_v16 = vld [vmem:[#allocation7] sm:$0xf] }
  0x45   :  { %569 = vmatpush.msrb.mxu0 %v506_v24  ;;  %764 = vmatpush.msrb.mxu3 %v554_v25  ;;  %v1056_v17 = vperm.slane %v162_v16, 0  ;;  %v1058_v18 = vperm.slane %v162_v16, 1  ;;  %v1060_v19 = vperm.slane %v162_v16, 2  ;;  %v1062_v20 = vperm.slane %v162_v16, 3 }
  0x46   :  { %634 = vmatpush.msrb.mxu1 %v522_v26  ;;  %700 = vmatpush.msrb.mxu2 %v537_v28 }
  0x47   :  { %570 = vmatpush.msrb.mxu0 %v505_v29  ;;  %765 = vmatpush.msrb.mxu3 %v553_v30 }
  0x48   :  { %194 = vmatmul.f32.gmra.mxu0 %v84_v22  ;;  %259 = vmatmul.f32.gmra.mxu1 %v84_v22 }
  0x49   :  { %635 = vmatpush.msrb.mxu1 %v521_v31  ;;  %701 = vmatpush.msrb.mxu2 %v536_v33 }
  0x4a   :  { %571 = vmatpush.msrb.mxu0 %v504_v34  ;;  %766 = vmatpush.msrb.mxu3 %v552_v35 }
  0x4b   :  { %636 = vmatpush.msrb.mxu1 %v520_v36  ;;  %702 = vmatpush.msrb.mxu2 %v535_v38 }
  0x4c   :  { %327 = vmatmul.f32.gmra.mxu2 %v85_v27  ;;  %392 = vmatmul.f32.gmra.mxu3 %v85_v27 }
  0x4d   :  { %572 = vmatpush.msrb.mxu0 %v503_v39  ;;  %767 = vmatpush.msrb.mxu3 %v551_v40 }
  0x4e   :  { %637 = vmatpush.msrb.mxu1 %v519_v41  ;;  %703 = vmatpush.msrb.mxu2 %v534_v43 }
  0x4f   :  { %573 = vmatpush.msrb.mxu0 %v502_v44  ;;  %768 = vmatpush.msrb.mxu3 %v550_v45 }
  0x50   :  { %197 = vmatmul.f32.gmra.mxu0 %v85_v27  ;;  %262 = vmatmul.f32.gmra.mxu1 %v85_v27 }
  0x51   :  { %638 = vmatpush.msrb.mxu1 %v518_v46  ;;  %704 = vmatpush.msrb.mxu2 %v533_v48 }
  0x52   :  { %574 = vmatpush.msrb.mxu0 %v501_v49  ;;  %769 = vmatpush.msrb.mxu3 %v549_v50 }
  0x53   :  { %639 = vmatpush.msrb.mxu1 %v517_v51  ;;  %705 = vmatpush.msrb.mxu2 %v532_v53 }
  0x54   :  { %330 = vmatmul.f32.gmra.mxu2 %v86_v32  ;;  %395 = vmatmul.f32.gmra.mxu3 %v86_v32 }
  0x55   :  { %575 = vmatpush.msrb.mxu0 %v500_v54  ;;  %770 = vmatpush.msrb.mxu3 %v548_v55 }
  0x56   :  { %640 = vmatpush.msrb.mxu1 %v516_v56  ;;  %706 = vmatpush.msrb.mxu2 %v531_v58 }
  0x57   :  { %576 = vmatpush.msrb.mxu0 %v499_v59  ;;  %771 = vmatpush.msrb.mxu3 %v547_v60 }
  0x58   :  { %200 = vmatmul.f32.gmra.mxu0 %v86_v32  ;;  %265 = vmatmul.f32.gmra.mxu1 %v86_v32 }
  0x59   :  { %641 = vmatpush.msrb.mxu1 %v515_v61  ;;  %707 = vmatpush.msrb.mxu2 %v530_v63 }
  0x5a   :  { %577 = vmatpush.msrb.mxu0 %v498_v0  ;;  %772 = vmatpush.msrb.mxu3 %v546_v1 }
  0x5b   :  { %642 = vmatpush.msrb.mxu1 %v514_v2  ;;  %708 = vmatpush.msrb.mxu2 %v529_v4 }
  0x5c   :  { %333 = vmatmul.f32.gmra.mxu2 %v87_v37  ;;  %398 = vmatmul.f32.gmra.mxu3 %v87_v37 }
  0x5d   :  { %578 = vmatpush.msrb.mxu0 %v497_v5  ;;  %773 = vmatpush.msrb.mxu3 %v545_v6 }
  0x5e   :  { %643 = vmatpush.msrb.mxu1 %v513_v7  ;;  %709 = vmatpush.msrb.mxu2 %v528_v8 }
  0x5f   :  { %579 = vmatpush.msrb.mxu0 %v496_v9  ;;  %774 = vmatpush.msrb.mxu3 %v544_v10 }
  0x60   :  { %203 = vmatmul.f32.gmra.mxu0 %v87_v37  ;;  %268 = vmatmul.f32.gmra.mxu1 %v87_v37 }
  0x61   :  { %644 = vmatpush.msrb.mxu1 %v512_v13 }
  0x64   :  { %336 = vmatmul.f32.gmra.mxu2 %v88_v42  ;;  %401 = vmatmul.f32.gmra.mxu3 %v88_v42 }
  0x68   :  { %206 = vmatmul.f32.gmra.mxu0 %v88_v42  ;;  %271 = vmatmul.f32.gmra.mxu1 %v88_v42 }
  0x6c   :  { %339 = vmatmul.f32.gmra.mxu2 %v89_v47  ;;  %404 = vmatmul.f32.gmra.mxu3 %v89_v47 }
  0x70   :  { %209 = vmatmul.f32.gmra.mxu0 %v89_v47  ;;  %274 = vmatmul.f32.gmra.mxu1 %v89_v47 }
  0x74   :  { %342 = vmatmul.f32.gmra.mxu2 %v90_v52  ;;  %407 = vmatmul.f32.gmra.mxu3 %v90_v52 }
  0x78   :  { %212 = vmatmul.f32.gmra.mxu0 %v90_v52  ;;  %277 = vmatmul.f32.gmra.mxu1 %v90_v52 }
  0x7c   :  { %345 = vmatmul.f32.gmra.mxu2 %v91_v57  ;;  %410 = vmatmul.f32.gmra.mxu3 %v91_v57 }
  0x80   :  { %215 = vmatmul.f32.gmra.mxu0 %v91_v57  ;;  %280 = vmatmul.f32.gmra.mxu1 %v91_v57 }
  0x84   :  { %348 = vmatmul.f32.gmra.mxu2 %v92_v62  ;;  %413 = vmatmul.f32.gmra.mxu3 %v92_v62 }
  0x88   :  { %218 = vmatmul.f32.gmra.mxu0 %v92_v62  ;;  %283 = vmatmul.f32.gmra.mxu1 %v92_v62 }
  0x8c   :  { %351 = vmatmul.f32.gmra.mxu2 %v93_v3  ;;  %416 = vmatmul.f32.gmra.mxu3 %v93_v3 }
  0x90   :  { %221 = vmatmul.f32.gmra.mxu0 %v93_v3  ;;  %286 = vmatmul.f32.gmra.mxu1 %v93_v3 }
  0x94   :  { %354 = vmatmul.f32.gmra.mxu2 %v94_v11  ;;  %419 = vmatmul.f32.gmra.mxu3 %v94_v11 }
  0x98   :  { %224 = vmatmul.f32.gmra.mxu0 %v94_v11  ;;  %289 = vmatmul.f32.gmra.mxu1 %v94_v11 }
  0x9c   :  { %357 = vmatmul.f32.gmra.mxu2 %v95_v12  ;;  %422 = vmatmul.f32.gmra.mxu3 %v95_v12 }
  0xa0   :  { %227 = vmatmul.f32.gmra.mxu0 %v95_v12  ;;  %292 = vmatmul.f32.gmra.mxu1 %v95_v12 }
  0xa4   :  { %360 = vmatmul.f32.gmra.mxu2 %v96_v14  ;;  %425 = vmatmul.f32.gmra.mxu3 %v96_v14 }
  0xa8   :  { %230 = vmatmul.f32.gmra.mxu0 %v96_v14  ;;  %295 = vmatmul.f32.gmra.mxu1 %v96_v14 }
  0xac   :  { %363 = vmatmul.f32.gmra.mxu2 %v97_v15  ;;  %428 = vmatmul.f32.gmra.mxu3 %v97_v15 }
  0xb0   :  { %233 = vmatmul.f32.gmra.mxu0 %v97_v15  ;;  %298 = vmatmul.f32.gmra.mxu1 %v97_v15 }
  0xb4   :  { %v189_v21 = vpop.f32.mrf.mxu0 }
  0xb5   :  { %v254_v22 = vpop.f32.mrf.mxu1  ;;  %v190_v23 = vadd.f32 %v189_v21, %v1056_v17 }
  0xb6   :  { %v255_v24 = vadd.f32 %v254_v22, %v1058_v18 }
  0xb7   :  { %v319_v25 = vpop.f32.mrf.mxu2  ;;  %v384_v26 = vpop.f32.mrf.mxu3  ;;  %v432_v28 = vmax.f32 %v190_v23, 0.0 }
  0xb8   :  { %v320_v27 = vadd.f32 %v319_v25, %v1060_v19  ;;  %v385_v29 = vadd.f32 %v384_v26, %v1062_v20  ;;  %v433_v30 = vmax.f32 %v255_v24, 0.0 }
  0xb9   :  { %580 = vmatmul.f32.vlgmr.msrb.gmra.mxu0 %v432_v28 }
  0xba   :  { %v434_v31 = vmax.f32 %v320_v27, 0.0  ;;  %v435_v32 = vmax.f32 %v385_v29, 0.0  ;;  %645 = vmatmul.f32.vlgmr.msrb.gmra.mxu1 %v433_v30 }
  0xbc   :  { %710 = vmatmul.f32.vlgmr.msrb.gmra.mxu2 %v434_v31  ;;  %775 = vmatmul.f32.vlgmr.msrb.gmra.mxu3 %v435_v32 }
  0xbd   :  { %v192_v33 = vpop.f32.mrf.mxu0  ;;  %v257_v34 = vpop.f32.mrf.mxu1 }
  0xbe   :  { %v193_v35 = vadd.f32 %v192_v33, %v1056_v17  ;;  %v258_v36 = vadd.f32 %v257_v34, %v1058_v18 }
  0xbf   :  { %v322_v37 = vpop.f32.mrf.mxu2  ;;  %v387_v38 = vpop.f32.mrf.mxu3 }
  0xc0   :  { %v323_v39 = vadd.f32 %v322_v37, %v1060_v19  ;;  %v388_v40 = vadd.f32 %v387_v38, %v1062_v20  ;;  %v436_v41 = vmax.f32 %v193_v35, 0.0  ;;  %v437_v42 = vmax.f32 %v258_v36, 0.0 }
  0xc2   :  { %v438_v43 = vmax.f32 %v323_v39, 0.0  ;;  %583 = vmatmul.f32.gmra.mxu0 %v436_v41  ;;  %v439_v44 = vmax.f32 %v388_v40, 0.0  ;;  %648 = vmatmul.f32.gmra.mxu1 %v437_v42 }
  0xc4   :  { %713 = vmatmul.f32.gmra.mxu2 %v438_v43  ;;  %778 = vmatmul.f32.gmra.mxu3 %v439_v44 }
  0xc5   :  { %v195_v45 = vpop.f32.mrf.mxu0  ;;  %v260_v46 = vpop.f32.mrf.mxu1 }
  0xc6   :  { %v196_v47 = vadd.f32 %v195_v45, %v1056_v17  ;;  %v261_v48 = vadd.f32 %v260_v46, %v1058_v18 }
  0xc7   :  { %v325_v49 = vpop.f32.mrf.mxu2  ;;  %v390_v50 = vpop.f32.mrf.mxu3 }
  0xc8   :  { %v326_v51 = vadd.f32 %v325_v49, %v1060_v19  ;;  %v391_v52 = vadd.f32 %v390_v50, %v1062_v20  ;;  %v440_v53 = vmax.f32 %v196_v47, 0.0  ;;  %v441_v54 = vmax.f32 %v261_v48, 0.0 }
  0xca   :  { %v442_v55 = vmax.f32 %v326_v51, 0.0  ;;  %586 = vmatmul.f32.gmra.mxu0 %v440_v53  ;;  %v443_v56 = vmax.f32 %v391_v52, 0.0  ;;  %651 = vmatmul.f32.gmra.mxu1 %v441_v54 }
  0xcc   :  { %716 = vmatmul.f32.gmra.mxu2 %v442_v55  ;;  %781 = vmatmul.f32.gmra.mxu3 %v443_v56 }
  0xcd   :  { %v198_v57 = vpop.f32.mrf.mxu0  ;;  %v263_v58 = vpop.f32.mrf.mxu1 }
  0xce   :  { %v199_v59 = vadd.f32 %v198_v57, %v1056_v17  ;;  %v264_v60 = vadd.f32 %v263_v58, %v1058_v18 }
  0xcf   :  { %v328_v61 = vpop.f32.mrf.mxu2  ;;  %v393_v62 = vpop.f32.mrf.mxu3 }
  0xd0   :  { %v329_v63 = vadd.f32 %v328_v61, %v1060_v19  ;;  %v394_v0 = vadd.f32 %v393_v62, %v1062_v20  ;;  %v444_v1 = vmax.f32 %v199_v59, 0.0  ;;  %v445_v2 = vmax.f32 %v264_v60, 0.0 }
  0xd2   :  { %v446_v3 = vmax.f32 %v329_v63, 0.0  ;;  %589 = vmatmul.f32.gmra.mxu0 %v444_v1  ;;  %v447_v4 = vmax.f32 %v394_v0, 0.0  ;;  %654 = vmatmul.f32.gmra.mxu1 %v445_v2 }
  0xd4   :  { %719 = vmatmul.f32.gmra.mxu2 %v446_v3  ;;  %784 = vmatmul.f32.gmra.mxu3 %v447_v4 }
  0xd5   :  { %v201_v5 = vpop.f32.mrf.mxu0  ;;  %v266_v6 = vpop.f32.mrf.mxu1 }
  0xd6   :  { %v202_v7 = vadd.f32 %v201_v5, %v1056_v17  ;;  %v267_v8 = vadd.f32 %v266_v6, %v1058_v18 }
  0xd7   :  { %v331_v9 = vpop.f32.mrf.mxu2  ;;  %v396_v10 = vpop.f32.mrf.mxu3 }
  0xd8   :  { %v332_v11 = vadd.f32 %v331_v9, %v1060_v19  ;;  %v397_v12 = vadd.f32 %v396_v10, %v1062_v20  ;;  %v448_v13 = vmax.f32 %v202_v7, 0.0  ;;  %v449_v14 = vmax.f32 %v267_v8, 0.0 }
  0xda   :  { %v450_v15 = vmax.f32 %v332_v11, 0.0  ;;  %592 = vmatmul.f32.gmra.mxu0 %v448_v13  ;;  %v451_v16 = vmax.f32 %v397_v12, 0.0  ;;  %657 = vmatmul.f32.gmra.mxu1 %v449_v14 }
  0xdc   :  { %722 = vmatmul.f32.gmra.mxu2 %v450_v15  ;;  %787 = vmatmul.f32.gmra.mxu3 %v451_v16 }
  0xdd   :  { %v204_v21 = vpop.f32.mrf.mxu0  ;;  %v269_v22 = vpop.f32.mrf.mxu1 }
  0xde   :  { %v205_v23 = vadd.f32 %v204_v21, %v1056_v17  ;;  %v270_v24 = vadd.f32 %v269_v22, %v1058_v18 }
  0xdf   :  { %v334_v25 = vpop.f32.mrf.mxu2  ;;  %v399_v26 = vpop.f32.mrf.mxu3 }
  0xe0   :  { %v335_v27 = vadd.f32 %v334_v25, %v1060_v19  ;;  %v400_v28 = vadd.f32 %v399_v26, %v1062_v20  ;;  %v452_v29 = vmax.f32 %v205_v23, 0.0  ;;  %v453_v30 = vmax.f32 %v270_v24, 0.0 }
  0xe2   :  { %v454_v31 = vmax.f32 %v335_v27, 0.0  ;;  %595 = vmatmul.f32.gmra.mxu0 %v452_v29  ;;  %v455_v32 = vmax.f32 %v400_v28, 0.0  ;;  %660 = vmatmul.f32.gmra.mxu1 %v453_v30 }
  0xe4   :  { %725 = vmatmul.f32.gmra.mxu2 %v454_v31  ;;  %790 = vmatmul.f32.gmra.mxu3 %v455_v32 }
  0xe5   :  { %v207_v33 = vpop.f32.mrf.mxu0  ;;  %v272_v34 = vpop.f32.mrf.mxu1 }
  0xe6   :  { %v208_v35 = vadd.f32 %v207_v33, %v1056_v17  ;;  %v273_v36 = vadd.f32 %v272_v34, %v1058_v18 }
  0xe7   :  { %v337_v37 = vpop.f32.mrf.mxu2  ;;  %v402_v38 = vpop.f32.mrf.mxu3 }
  0xe8   :  { %v338_v39 = vadd.f32 %v337_v37, %v1060_v19  ;;  %v403_v40 = vadd.f32 %v402_v38, %v1062_v20  ;;  %v456_v41 = vmax.f32 %v208_v35, 0.0  ;;  %v457_v42 = vmax.f32 %v273_v36, 0.0 }
  0xea   :  { %v458_v43 = vmax.f32 %v338_v39, 0.0  ;;  %598 = vmatmul.f32.gmra.mxu0 %v456_v41  ;;  %v459_v44 = vmax.f32 %v403_v40, 0.0  ;;  %663 = vmatmul.f32.gmra.mxu1 %v457_v42 }
  0xec   :  { %728 = vmatmul.f32.gmra.mxu2 %v458_v43  ;;  %793 = vmatmul.f32.gmra.mxu3 %v459_v44 }
  0xed   :  { %v210_v45 = vpop.f32.mrf.mxu0  ;;  %v275_v46 = vpop.f32.mrf.mxu1 }
  0xee   :  { %v211_v47 = vadd.f32 %v210_v45, %v1056_v17  ;;  %v276_v48 = vadd.f32 %v275_v46, %v1058_v18 }
  0xef   :  { %v340_v49 = vpop.f32.mrf.mxu2  ;;  %v405_v50 = vpop.f32.mrf.mxu3 }
  0xf0   :  { %v341_v51 = vadd.f32 %v340_v49, %v1060_v19  ;;  %v406_v52 = vadd.f32 %v405_v50, %v1062_v20  ;;  %v460_v53 = vmax.f32 %v211_v47, 0.0  ;;  %v461_v54 = vmax.f32 %v276_v48, 0.0 }
  0xf2   :  { %v462_v55 = vmax.f32 %v341_v51, 0.0  ;;  %601 = vmatmul.f32.gmra.mxu0 %v460_v53  ;;  %v463_v56 = vmax.f32 %v406_v52, 0.0  ;;  %666 = vmatmul.f32.gmra.mxu1 %v461_v54 }
  0xf4   :  { %731 = vmatmul.f32.gmra.mxu2 %v462_v55  ;;  %796 = vmatmul.f32.gmra.mxu3 %v463_v56 }
  0xf5   :  { %v213_v57 = vpop.f32.mrf.mxu0  ;;  %v278_v58 = vpop.f32.mrf.mxu1 }
  0xf6   :  { %v214_v59 = vadd.f32 %v213_v57, %v1056_v17  ;;  %v279_v60 = vadd.f32 %v278_v58, %v1058_v18 }
  0xf7   :  { %v343_v61 = vpop.f32.mrf.mxu2  ;;  %v408_v62 = vpop.f32.mrf.mxu3 }
  0xf8   :  { %v344_v63 = vadd.f32 %v343_v61, %v1060_v19  ;;  %v464_v0 = vmax.f32 %v214_v59, 0.0  ;;  %v409_v1 = vadd.f32 %v408_v62, %v1062_v20  ;;  %v465_v2 = vmax.f32 %v279_v60, 0.0 }
  0xfa   :  { %v466_v3 = vmax.f32 %v344_v63, 0.0  ;;  %v467_v4 = vmax.f32 %v409_v1, 0.0  ;;  %604 = vmatmul.f32.gmra.mxu0 %v464_v0  ;;  %669 = vmatmul.f32.gmra.mxu1 %v465_v2 }
  0xfc   :  { %734 = vmatmul.f32.gmra.mxu2 %v466_v3  ;;  %799 = vmatmul.f32.gmra.mxu3 %v467_v4 }
  0xfd   :  { %v216_v5 = vpop.f32.mrf.mxu0  ;;  %v281_v6 = vpop.f32.mrf.mxu1 }
  0xfe   :  { %v217_v7 = vadd.f32 %v216_v5, %v1056_v17  ;;  %v282_v8 = vadd.f32 %v281_v6, %v1058_v18 }
  0xff   :  { %v346_v9 = vpop.f32.mrf.mxu2  ;;  %v411_v10 = vpop.f32.mrf.mxu3 }
 0x100   :  { %v347_v11 = vadd.f32 %v346_v9, %v1060_v19  ;;  %v468_v12 = vmax.f32 %v217_v7, 0.0  ;;  %v412_v13 = vadd.f32 %v411_v10, %v1062_v20  ;;  %v469_v14 = vmax.f32 %v282_v8, 0.0 }
 0x102   :  { %v470_v15 = vmax.f32 %v347_v11, 0.0  ;;  %v471_v16 = vmax.f32 %v412_v13, 0.0  ;;  %607 = vmatmul.f32.gmra.mxu0 %v468_v12  ;;  %672 = vmatmul.f32.gmra.mxu1 %v469_v14 }
 0x104   :  { %737 = vmatmul.f32.gmra.mxu2 %v470_v15  ;;  %802 = vmatmul.f32.gmra.mxu3 %v471_v16 }
 0x105   :  { %v219_v21 = vpop.f32.mrf.mxu0  ;;  %v284_v22 = vpop.f32.mrf.mxu1 }
 0x106   :  { %v220_v23 = vadd.f32 %v219_v21, %v1056_v17  ;;  %v285_v24 = vadd.f32 %v284_v22, %v1058_v18 }
 0x107   :  { %v349_v25 = vpop.f32.mrf.mxu2  ;;  %v414_v26 = vpop.f32.mrf.mxu3 }
 0x108   :  { %v350_v27 = vadd.f32 %v349_v25, %v1060_v19  ;;  %v472_v28 = vmax.f32 %v220_v23, 0.0  ;;  %v415_v29 = vadd.f32 %v414_v26, %v1062_v20  ;;  %v473_v30 = vmax.f32 %v285_v24, 0.0 }
 0x10a   :  { %v474_v31 = vmax.f32 %v350_v27, 0.0  ;;  %v475_v32 = vmax.f32 %v415_v29, 0.0  ;;  %610 = vmatmul.f32.gmra.mxu0 %v472_v28  ;;  %675 = vmatmul.f32.gmra.mxu1 %v473_v30 }
 0x10c   :  { %740 = vmatmul.f32.gmra.mxu2 %v474_v31  ;;  %805 = vmatmul.f32.gmra.mxu3 %v475_v32 }
 0x10d   :  { %v222_v33 = vpop.f32.mrf.mxu0  ;;  %v287_v34 = vpop.f32.mrf.mxu1 }
 0x10e   :  { %v223_v35 = vadd.f32 %v222_v33, %v1056_v17  ;;  %v288_v36 = vadd.f32 %v287_v34, %v1058_v18 }
 0x10f   :  { %v352_v37 = vpop.f32.mrf.mxu2  ;;  %v417_v38 = vpop.f32.mrf.mxu3 }
 0x110   :  { %v353_v39 = vadd.f32 %v352_v37, %v1060_v19  ;;  %v476_v40 = vmax.f32 %v223_v35, 0.0  ;;  %v418_v41 = vadd.f32 %v417_v38, %v1062_v20  ;;  %v477_v42 = vmax.f32 %v288_v36, 0.0 }
 0x112   :  { %v478_v43 = vmax.f32 %v353_v39, 0.0  ;;  %v479_v44 = vmax.f32 %v418_v41, 0.0  ;;  %613 = vmatmul.f32.gmra.mxu0 %v476_v40  ;;  %678 = vmatmul.f32.gmra.mxu1 %v477_v42 }
 0x114   :  { %743 = vmatmul.f32.gmra.mxu2 %v478_v43  ;;  %808 = vmatmul.f32.gmra.mxu3 %v479_v44 }
 0x115   :  { %v225_v45 = vpop.f32.mrf.mxu0  ;;  %v290_v46 = vpop.f32.mrf.mxu1 }
 0x116   :  { %v226_v47 = vadd.f32 %v225_v45, %v1056_v17  ;;  %v291_v48 = vadd.f32 %v290_v46, %v1058_v18 }
 0x117   :  { %v355_v49 = vpop.f32.mrf.mxu2  ;;  %v420_v50 = vpop.f32.mrf.mxu3 }
 0x118   :  { %v356_v51 = vadd.f32 %v355_v49, %v1060_v19  ;;  %v480_v52 = vmax.f32 %v226_v47, 0.0  ;;  %v421_v53 = vadd.f32 %v420_v50, %v1062_v20  ;;  %v481_v54 = vmax.f32 %v291_v48, 0.0 }
 0x11a   :  { %v482_v55 = vmax.f32 %v356_v51, 0.0  ;;  %v483_v56 = vmax.f32 %v421_v53, 0.0  ;;  %616 = vmatmul.f32.gmra.mxu0 %v480_v52  ;;  %681 = vmatmul.f32.gmra.mxu1 %v481_v54 }
 0x11c   :  { %746 = vmatmul.f32.gmra.mxu2 %v482_v55  ;;  %811 = vmatmul.f32.gmra.mxu3 %v483_v56 }
 0x11d   :  { %v228_v57 = vpop.f32.mrf.mxu0  ;;  %v293_v58 = vpop.f32.mrf.mxu1 }
 0x11e   :  { %v229_v59 = vadd.f32 %v228_v57, %v1056_v17  ;;  %v294_v60 = vadd.f32 %v293_v58, %v1058_v18 }
 0x11f   :  { %v358_v61 = vpop.f32.mrf.mxu2  ;;  %v423_v62 = vpop.f32.mrf.mxu3 }
 0x120   :  { %v359_v63 = vadd.f32 %v358_v61, %v1060_v19  ;;  %v484_v0 = vmax.f32 %v229_v59, 0.0  ;;  %v424_v1 = vadd.f32 %v423_v62, %v1062_v20  ;;  %v485_v2 = vmax.f32 %v294_v60, 0.0 }
 0x122   :  { %v486_v3 = vmax.f32 %v359_v63, 0.0  ;;  %v487_v4 = vmax.f32 %v424_v1, 0.0  ;;  %619 = vmatmul.f32.gmra.mxu0 %v484_v0  ;;  %684 = vmatmul.f32.gmra.mxu1 %v485_v2 }
 0x124   :  { %749 = vmatmul.f32.gmra.mxu2 %v486_v3  ;;  %814 = vmatmul.f32.gmra.mxu3 %v487_v4 }
 0x125   :  { %v231_v5 = vpop.f32.mrf.mxu0  ;;  %v296_v6 = vpop.f32.mrf.mxu1 }
 0x126   :  { %v232_v7 = vadd.f32 %v231_v5, %v1056_v17  ;;  %v297_v8 = vadd.f32 %v296_v6, %v1058_v18 }
 0x127   :  { %v361_v9 = vpop.f32.mrf.mxu2  ;;  %v426_v10 = vpop.f32.mrf.mxu3 }
 0x128   :  { %v362_v11 = vadd.f32 %v361_v9, %v1060_v19  ;;  %v488_v12 = vmax.f32 %v232_v7, 0.0  ;;  %v427_v13 = vadd.f32 %v426_v10, %v1062_v20  ;;  %v489_v14 = vmax.f32 %v297_v8, 0.0 }
 0x12a   :  { %v490_v15 = vmax.f32 %v362_v11, 0.0  ;;  %v491_v16 = vmax.f32 %v427_v13, 0.0  ;;  %622 = vmatmul.f32.gmra.mxu0 %v488_v12  ;;  %687 = vmatmul.f32.gmra.mxu1 %v489_v14 }
 0x12c   :  { %752 = vmatmul.f32.gmra.mxu2 %v490_v15  ;;  %817 = vmatmul.f32.gmra.mxu3 %v491_v16 }
 0x12d   :  { %v234_v21 = vpop.f32.mrf.mxu0  ;;  %v299_v22 = vpop.f32.mrf.mxu1 }
 0x12e   :  { %v235_v23 = vadd.f32 %v234_v21, %v1056_v17  ;;  %v300_v24 = vadd.f32 %v299_v22, %v1058_v18  ;;  %v1131_v17 = vld [vmem:[%s1159_s4] ss:$0 sm:$0xff]  ;;  %s1007_s4 = smov [#allocation10]  }
 0x12f   :  { %v364_v25 = vpop.f32.mrf.mxu2  ;;  %v429_v26 = vpop.f32.mrf.mxu3  ;;  %s844_s15 = sshll.u32 %s1007_s4, 4  ;;  %s845_s15 = int_to_ptr.vmem [resolvable:$true] %s844_s15 }
 0x130   :  { %v365_v27 = vadd.f32 %v364_v25, %v1060_v19  ;;  %v492_v28 = vmax.f32 %v235_v23, 0.0  ;;  %v430_v29 = vadd.f32 %v429_v26, %v1062_v20  ;;  %v493_v30 = vmax.f32 %v300_v24, 0.0 }
 0x132   :  { %v494_v31 = vmax.f32 %v365_v27, 0.0  ;;  %v495_v32 = vmax.f32 %v430_v29, 0.0  ;;  %625 = vmatmul.f32.gmra.mxu0 %v492_v28  ;;  %690 = vmatmul.f32.gmra.mxu1 %v493_v30 }
 0x134   :  { %755 = vmatmul.f32.gmra.mxu2 %v494_v31  ;;  %820 = vmatmul.f32.gmra.mxu3 %v495_v32 }
 0x136   :  { %v581_v18 = vpop.f32.mrf.mxu0 }
 0x137   :  { %v646_v33 = vpop.f32.mrf.mxu1  ;;  %v582_v34 = vadd.f32 %v1131_v17, %v581_v18 }
 0x139   :  { %v647_v19 = vadd.f32 %v646_v33, %v582_v34 }
 0x13f   :  { %v711_v35 = vpop.f32.mrf.mxu2  ;;  %v776_v36 = vpop.f32.mrf.mxu3 }
 0x140   :  { %v712_v20 = vadd.f32 %v711_v35, %v647_v19  ;;  %v584_v37 = vpop.f32.mrf.mxu0  ;;  %v649_v38 = vpop.f32.mrf.mxu1 }
 0x141   :  { %v585_v39 = vadd.f32 %v1131_v17, %v584_v37 }
 0x142   :  { %v777_v40 = vadd.f32 %v776_v36, %v712_v20 }
 0x143   :  { %v650_v41 = vadd.f32 %v649_v38, %v585_v39 }
 0x144   :  { %824 = vst [vmem:[#allocation10] sm:$0xff] %v777_v40 }
 0x147   :  { %v714_v42 = vpop.f32.mrf.mxu2  ;;  %v779_v43 = vpop.f32.mrf.mxu3 }
 0x148   :  { %v715_v44 = vadd.f32 %v714_v42, %v650_v41  ;;  %v587_v45 = vpop.f32.mrf.mxu0  ;;  %v652_v46 = vpop.f32.mrf.mxu1 }
 0x149   :  { %v588_v47 = vadd.f32 %v1131_v17, %v587_v45 }
 0x14a   :  { %v780_v48 = vadd.f32 %v779_v43, %v715_v44 }
 0x14b   :  { %v653_v49 = vadd.f32 %v652_v46, %v588_v47 }
 0x14c   :  { %825 = vst [vmem:[#allocation10 + $0x8] sm:$0xff] %v780_v48 }
 0x14f   :  { %v717_v50 = vpop.f32.mrf.mxu2  ;;  %v782_v51 = vpop.f32.mrf.mxu3 }
 0x150   :  { %v718_v52 = vadd.f32 %v717_v50, %v653_v49  ;;  %v590_v53 = vpop.f32.mrf.mxu0  ;;  %v655_v54 = vpop.f32.mrf.mxu1 }
 0x151   :  { %v591_v55 = vadd.f32 %v1131_v17, %v590_v53 }
 0x152   :  { %v783_v56 = vadd.f32 %v782_v51, %v718_v52 }
 0x153   :  { %v656_v57 = vadd.f32 %v655_v54, %v591_v55 }
 0x154   :  { %826 = vst [vmem:[#allocation10 + $0x10] sm:$0xff] %v783_v56 }
 0x157   :  { %v720_v58 = vpop.f32.mrf.mxu2  ;;  %v785_v59 = vpop.f32.mrf.mxu3 }
 0x158   :  { %v721_v60 = vadd.f32 %v720_v58, %v656_v57  ;;  %v593_v61 = vpop.f32.mrf.mxu0  ;;  %v658_v62 = vpop.f32.mrf.mxu1 }
 0x159   :  { %v594_v63 = vadd.f32 %v1131_v17, %v593_v61 }
 0x15a   :  { %v786_v0 = vadd.f32 %v785_v59, %v721_v60 }
 0x15b   :  { %v659_v1 = vadd.f32 %v658_v62, %v594_v63 }
 0x15c   :  { %827 = vst [vmem:[#allocation10 + $0x18] sm:$0xff] %v786_v0 }
 0x15f   :  { %v723_v2 = vpop.f32.mrf.mxu2  ;;  %v788_v3 = vpop.f32.mrf.mxu3 }
 0x160   :  { %v724_v4 = vadd.f32 %v723_v2, %v659_v1  ;;  %v596_v5 = vpop.f32.mrf.mxu0  ;;  %v661_v6 = vpop.f32.mrf.mxu1 }
 0x161   :  { %v597_v7 = vadd.f32 %v1131_v17, %v596_v5 }
 0x162   :  { %v789_v8 = vadd.f32 %v788_v3, %v724_v4 }
 0x163   :  { %v662_v9 = vadd.f32 %v661_v6, %v597_v7 }
 0x164   :  { %828 = vst [vmem:[#allocation10 + $0x20] sm:$0xff] %v789_v8 }
 0x167   :  { %v726_v10 = vpop.f32.mrf.mxu2  ;;  %v791_v11 = vpop.f32.mrf.mxu3 }
 0x168   :  { %v727_v12 = vadd.f32 %v726_v10, %v662_v9  ;;  %v599_v13 = vpop.f32.mrf.mxu0  ;;  %v664_v14 = vpop.f32.mrf.mxu1 }
 0x169   :  { %v600_v15 = vadd.f32 %v1131_v17, %v599_v13 }
 0x16a   :  { %v792_v16 = vadd.f32 %v791_v11, %v727_v12 }
 0x16b   :  { %v665_v21 = vadd.f32 %v664_v14, %v600_v15 }
 0x16c   :  { %829 = vst [vmem:[#allocation10 + $0x28] sm:$0xff] %v792_v16 }
 0x16f   :  { %v729_v22 = vpop.f32.mrf.mxu2  ;;  %v794_v23 = vpop.f32.mrf.mxu3 }
 0x170   :  { %v730_v24 = vadd.f32 %v729_v22, %v665_v21  ;;  %v602_v25 = vpop.f32.mrf.mxu0  ;;  %v667_v26 = vpop.f32.mrf.mxu1 }
 0x171   :  { %v603_v27 = vadd.f32 %v1131_v17, %v602_v25 }
 0x172   :  { %v795_v28 = vadd.f32 %v794_v23, %v730_v24 }
 0x173   :  { %v668_v29 = vadd.f32 %v667_v26, %v603_v27 }
 0x174   :  { %830 = vst [vmem:[#allocation10 + $0x30] sm:$0xff] %v795_v28 }
 0x177   :  { %v732_v30 = vpop.f32.mrf.mxu2  ;;  %v797_v31 = vpop.f32.mrf.mxu3 }
 0x178   :  { %v733_v32 = vadd.f32 %v732_v30, %v668_v29  ;;  %v605_v18 = vpop.f32.mrf.mxu0  ;;  %v670_v33 = vpop.f32.mrf.mxu1 }
 0x179   :  { %v606_v34 = vadd.f32 %v1131_v17, %v605_v18 }
 0x17a   :  { %v798_v19 = vadd.f32 %v797_v31, %v733_v32 }
 0x17b   :  { %v671_v35 = vadd.f32 %v670_v33, %v606_v34 }
 0x17c   :  { %831 = vst [vmem:[#allocation10 + $0x38] sm:$0xff] %v798_v19 }
 0x17f   :  { %v735_v36 = vpop.f32.mrf.mxu2  ;;  %v800_v20 = vpop.f32.mrf.mxu3 }
 0x180   :  { %v736_v37 = vadd.f32 %v735_v36, %v671_v35  ;;  %v608_v38 = vpop.f32.mrf.mxu0  ;;  %v673_v39 = vpop.f32.mrf.mxu1 }
 0x181   :  { %v609_v40 = vadd.f32 %v1131_v17, %v608_v38 }
 0x182   :  { %v801_v41 = vadd.f32 %v800_v20, %v736_v37 }
 0x183   :  { %v674_v42 = vadd.f32 %v673_v39, %v609_v40 }
 0x184   :  { %832 = vst [vmem:[#allocation10 + $0x40] sm:$0xff] %v801_v41 }
 0x187   :  { %v738_v43 = vpop.f32.mrf.mxu2  ;;  %v803_v44 = vpop.f32.mrf.mxu3 }
 0x188   :  { %v739_v45 = vadd.f32 %v738_v43, %v674_v42  ;;  %v611_v46 = vpop.f32.mrf.mxu0  ;;  %v676_v47 = vpop.f32.mrf.mxu1 }
 0x189   :  { %v612_v48 = vadd.f32 %v1131_v17, %v611_v46 }
 0x18a   :  { %v804_v49 = vadd.f32 %v803_v44, %v739_v45 }
 0x18b   :  { %v677_v50 = vadd.f32 %v676_v47, %v612_v48 }
 0x18c   :  { %833 = vst [vmem:[#allocation10 + $0x48] sm:$0xff] %v804_v49 }
 0x18f   :  { %v741_v51 = vpop.f32.mrf.mxu2  ;;  %v806_v52 = vpop.f32.mrf.mxu3 }
 0x190   :  { %v742_v53 = vadd.f32 %v741_v51, %v677_v50  ;;  %v614_v54 = vpop.f32.mrf.mxu0  ;;  %v679_v55 = vpop.f32.mrf.mxu1 }
 0x191   :  { %v615_v56 = vadd.f32 %v1131_v17, %v614_v54 }
 0x192   :  { %v807_v57 = vadd.f32 %v806_v52, %v742_v53 }
 0x193   :  { %v680_v58 = vadd.f32 %v679_v55, %v615_v56 }
 0x194   :  { %834 = vst [vmem:[#allocation10 + $0x50] sm:$0xff] %v807_v57 }
 0x197   :  { %v744_v59 = vpop.f32.mrf.mxu2  ;;  %v809_v60 = vpop.f32.mrf.mxu3 }
 0x198   :  { %v745_v61 = vadd.f32 %v744_v59, %v680_v58  ;;  %v617_v62 = vpop.f32.mrf.mxu0  ;;  %v682_v63 = vpop.f32.mrf.mxu1 }
 0x199   :  { %v618_v0 = vadd.f32 %v1131_v17, %v617_v62 }
 0x19a   :  { %v810_v1 = vadd.f32 %v809_v60, %v745_v61 }
 0x19b   :  { %v683_v2 = vadd.f32 %v682_v63, %v618_v0 }
 0x19c   :  { %835 = vst [vmem:[#allocation10 + $0x58] sm:$0xff] %v810_v1 }
 0x19f   :  { %v747_v3 = vpop.f32.mrf.mxu2  ;;  %v812_v4 = vpop.f32.mrf.mxu3 }
 0x1a0   :  { %v748_v5 = vadd.f32 %v747_v3, %v683_v2  ;;  %v620_v6 = vpop.f32.mrf.mxu0  ;;  %v685_v7 = vpop.f32.mrf.mxu1 }
 0x1a1   :  { %v621_v8 = vadd.f32 %v1131_v17, %v620_v6 }
 0x1a2   :  { %v813_v9 = vadd.f32 %v812_v4, %v748_v5 }
 0x1a3   :  { %v686_v10 = vadd.f32 %v685_v7, %v621_v8 }
 0x1a4   :  { %836 = vst [vmem:[#allocation10 + $0x60] sm:$0xff] %v813_v9 }
 0x1a7   :  { %v750_v11 = vpop.f32.mrf.mxu2  ;;  %v815_v12 = vpop.f32.mrf.mxu3 }
 0x1a8   :  { %v751_v13 = vadd.f32 %v750_v11, %v686_v10  ;;  %v623_v14 = vpop.f32.mrf.mxu0  ;;  %v688_v15 = vpop.f32.mrf.mxu1 }
 0x1a9   :  { %v624_v16 = vadd.f32 %v1131_v17, %v623_v14 }
 0x1aa   :  { %v816_v21 = vadd.f32 %v815_v12, %v751_v13 }
 0x1ab   :  { %v689_v22 = vadd.f32 %v688_v15, %v624_v16 }
 0x1ac   :  { %837 = vst [vmem:[#allocation10 + $0x68] sm:$0xff] %v816_v21 }
 0x1af   :  { %v753_v23 = vpop.f32.mrf.mxu2  ;;  %v818_v24 = vpop.f32.mrf.mxu3 }
 0x1b0   :  { %v754_v25 = vadd.f32 %v753_v23, %v689_v22  ;;  %v626_v26 = vpop.f32.mrf.mxu0  ;;  %v691_v28 = vpop.f32.mrf.mxu1 }
 0x1b1   :  { %v627_v27 = vadd.f32 %v1131_v17, %v626_v26 }
 0x1b2   :  { %v819_v29 = vadd.f32 %v818_v24, %v754_v25 }
 0x1b3   :  { %v692_v30 = vadd.f32 %v691_v28, %v627_v27 }
 0x1b4   :  { %838 = vst [vmem:[#allocation10 + $0x70] sm:$0xff] %v819_v29 }
 0x1b7   :  { %v756_v31 = vpop.f32.mrf.mxu2  ;;  %v821_v32 = vpop.f32.mrf.mxu3 }
 0x1b8   :  { %v757_v18 = vadd.f32 %v756_v31, %v692_v30 }
 0x1ba   :  { %v822_v33 = vadd.f32 %v821_v32, %v757_v18 }
 0x1bc   :  { %839 = vst [vmem:[#allocation10 + $0x78] sm:$0xff] %v822_v33 }
 0x1bd   :  { %852 = dma.vmem_to_hbm [thread:$0]  %s845_s15, 2048, %s847_s18, [#allocation4], %s1003_s30, %s1003_s30, %s1004_s6  }
 0x1be   :  { %997 = dma.done.wait [#allocation4], 2048  }
 0x1bf   :  { %998 = vsyncadd [#allocation4], 4294965248 }
 0x1c0   :  { %857 = vsyncpa [#allocation3], 1 }
 0x1c1   :  { %858 = vsyncpa [#allocation6], 1 }
 0x1c2   :  { %859 = vsyncpa [#allocation9], 1 }
 0x1c3   :  { %860 = vsyncpa [#allocation4], 1 }

</bundles_post_ra>
